<compile_context>
chip_gen: v7x
topology: tpu7x:2x2x1
jax: 0.10.0
libtpu: 0.0.40
codegen_flags: <defaults>
</compile_context>

<pallas_src>
import jax
import jax.numpy as jnp
from jax.experimental import pallas as pl
from jax.experimental.pallas import tpu as pltpu


# ---------------------------------------------------------------------------
# Pallas kernel: fused gather + wavefront multi-layer RNN + head + CE + argmax
# ---------------------------------------------------------------------------
def rnn_wave_kernel(ids_ref,    # (T*B, 1)   i32  time-major token ids
                    embp_ref,   # (VOCAB, L*H) f32 embd@Wih0.T + bias0, zero-padded
                    bigw_ref,   # (L*H, L*H) f32  block-structured wavefront weights
                    biasr_ref,  # (1, L*H)   f32  per-layer (l>=1) fused biases
                    wout_ref,   # (H, 2)     f32  output head weights (transposed)
                    bout_ref,   # (1, 2)     f32  output head bias
                    tgt_ref,    # (B, 1)     i32  targets in {0,1}
                    pred_ref,   # (B, 1)     i32  out: argmax
                    loss_ref):  # (1, 1)     f32  out: mean CE loss
    TB = ids_ref.shape[0]
    VOCAB, LH = embp_ref.shape
    H = wout_ref.shape[0]
    L = LH // H
    B = tgt_ref.shape[0]
    T = TB // B

    # --- fused token gather + embedding + layer-0 projection (+ bias0):
    #     one-hot (TB, VOCAB) @ (VOCAB, L*H).  Columns >= H of embp are zero so
    #     the result lands directly in the layer-0 block of the wave state.
    ids = ids_ref[...]                                              # (TB, 1) i32
    vocab_iota = jax.lax.broadcasted_iota(jnp.int32, (TB, VOCAB), 1)
    onehot = (vocab_iota == ids).astype(jnp.float32)                # (TB, VOCAB)
    biasr = biasr_ref[...]                                          # (1, LH)
    add_all = jnp.dot(onehot, embp_ref[...],
                      preferred_element_type=jnp.float32) + biasr   # (TB, LH)

    bigw = bigw_ref[...]                                            # (LH, LH)

    # --- layer/time wavefront ------------------------------------------------
    # State hcat = [h_layer0 | h_layer1 | ... | h_layer(L-1)], shape (B, L*H).
    # At wave s, layer l advances to timestep t = s - l; layer l's input is the
    # PRE-wave state of layer l-1 (its timestep s-l output from wave s-1), so a
    # single hcat @ bigw matmul + tanh performs all layers' updates at once.
    hcat = jnp.zeros((B, LH), jnp.float32)
    for s in range(T + L - 1):                       # static unroll (9 waves)
        pre = jnp.dot(hcat, bigw, preferred_element_type=jnp.float32)
        if s < T:
            pre = pre + add_all[s * B:(s + 1) * B, :]   # layer-0 x_t + all biases
        else:
            pre = pre + biasr                           # layer-0 retired; l>=1 biases
        hnew = jnp.tanh(pre)
        if s < L - 1:
            # head of the wavefront: layers l > s have no input yet -> keep zero
            col = jax.lax.broadcasted_iota(jnp.int32, (B, LH), 1)
            hnew = jnp.where(col < (s + 1) * H, hnew, hcat)
        hcat = hnew
    # (tail waves overwrite lower-layer blocks with unused values; each layer l
    #  reads layer l-1 only within l-1's valid wave range, so this is harmless.)

    h_top = hcat[:, (L - 1) * H:]                    # (B, H) last layer, last step

    # final linear head: logits (B, 2)
    logits = jnp.dot(h_top, wout_ref[...],
                     preferred_element_type=jnp.float32) + bout_ref[...]
    l0 = logits[:, 0:1]                              # (B, 1)
    l1 = logits[:, 1:2]                              # (B, 1)

    # cross entropy (mean over batch), 2 classes -> explicit log-sum-exp
    # (assumes targets in {0, 1}, matching the Linear(H, 2) head)
    m = jnp.maximum(l0, l1)
    lse = m + jnp.log(jnp.exp(l0 - m) + jnp.exp(l1 - m))            # (B, 1)
    tgt = tgt_ref[...]                                              # (B, 1) i32
    tgt_logit = jnp.where(tgt == 1, l1, l0)                         # (B, 1)
    loss_ref[...] = jnp.mean(lse - tgt_logit).reshape(1, 1)

    # argmax over 2 classes (ties -> index 0, matching torch/jnp argmax)
    pred_ref[...] = (l1 > l0).astype(jnp.int32)


# ---------------------------------------------------------------------------
# Parameter init (deterministic, PyTorch-default-like uniform(-1/sqrt(H), 1/sqrt(H)))
# ---------------------------------------------------------------------------
def init_params(key, vocab, emb_dim, hidden, num_layers):
    ks = jax.random.split(key, 3 + 4 * num_layers)
    bound = 1.0 / jnp.sqrt(hidden)
    params = {"embd": jax.random.normal(ks[0], (vocab, emb_dim), jnp.float32)}
    w_ih, w_hh, b_ih, b_hh = [], [], [], []
    for l in range(num_layers):
        in_dim = emb_dim if l == 0 else hidden
        k0, k1, k2, k3 = jax.random.split(ks[1 + l], 4)
        w_ih.append(jax.random.uniform(k0, (hidden, in_dim), jnp.float32, -bound, bound))
        w_hh.append(jax.random.uniform(k1, (hidden, hidden), jnp.float32, -bound, bound))
        b_ih.append(jax.random.uniform(k2, (hidden,), jnp.float32, -bound, bound))
        b_hh.append(jax.random.uniform(k3, (hidden,), jnp.float32, -bound, bound))
    params["w_ih"] = w_ih
    params["w_hh"] = w_hh
    params["b_ih"] = b_ih
    params["b_hh"] = b_hh
    params["w_out"] = jax.random.uniform(ks[-2], (2, hidden), jnp.float32, -bound, bound)
    params["b_out"] = jax.random.uniform(ks[-1], (2,), jnp.float32, -bound, bound)
    return params


# ---------------------------------------------------------------------------
# One-time weight packing (embedding fold, block-structured wavefront weight,
# bias fusion, transposes) — all hoisted out of the per-call forward path.
# ---------------------------------------------------------------------------
def pack_params(params, hidden, num_layers):
    H, L = hidden, num_layers
    LH = L * H
    embd = params["embd"].astype(jnp.float32)
    vocab = embd.shape[0]

    # fold embedding + layer-0 input weights + layer-0 biases, pad to (VOCAB, L*H)
    emb_proj = embd @ params["w_ih"][0].T + params["b_ih"][0] + params["b_hh"][0]
    emb_proj_pad = jnp.zeros((vocab, LH), jnp.float32).at[:, :H].set(emb_proj)

    # block-structured wavefront weight: column block l receives
    #   rows [l*H:(l+1)*H]     <- w_hh[l].T  (recurrent term)
    #   rows [(l-1)*H:l*H]     <- w_ih[l].T  (input from layer l-1), l >= 1
    bigw = jnp.zeros((LH, LH), jnp.float32)
    biasr = jnp.zeros((1, LH), jnp.float32)
    for l in range(L):
        bigw = bigw.at[l * H:(l + 1) * H, l * H:(l + 1) * H].set(params["w_hh"][l].T)
        if l >= 1:
            bigw = bigw.at[(l - 1) * H:l * H, l * H:(l + 1) * H].set(params["w_ih"][l].T)
            biasr = biasr.at[0, l * H:(l + 1) * H].set(params["b_ih"][l] + params["b_hh"][l])

    return {
        "emb_proj": emb_proj_pad,                 # (VOCAB, L*H)
        "bigw": bigw,                             # (L*H, L*H)
        "biasr": biasr,                           # (1, L*H)
        "wout": params["w_out"].T,                # (H, 2)
        "bout": params["b_out"].reshape(1, 2),    # (1, 2)
    }


# ---------------------------------------------------------------------------
# Wrapper: the whole forward is one pallas_call (only int id/target reshapes
# remain outside — 64 bytes of int32 traffic).
# ---------------------------------------------------------------------------
def my_model_forward(input_text, targets, packed):
    B, T = input_text.shape
    VOCAB, LH = packed["emb_proj"].shape
    H = packed["wout"].shape[0]
    L = LH // H
    TB = T * B

    ids_tm = jnp.transpose(input_text).reshape(TB, 1).astype(jnp.int32)   # time-major
    tgt2d = targets.reshape(B, 1).astype(jnp.int32)

    flops = int(2 * (TB * VOCAB * LH            # fused gather/embed/proj matmul
                     + (T + L - 1) * B * LH * LH  # wavefront matmuls
                     + B * H * 2))                # output head
    cost = pl.CostEstimate(
        flops=flops,
        transcendentals=int((T + L - 1) * B * LH + 4 * B),
        bytes_accessed=int(4 * (TB + VOCAB * LH + LH * LH + LH
                                + H * 2 + 2 + 2 * B + 1)))

    vmem = pl.BlockSpec(memory_space=pltpu.MemorySpace.VMEM)
    pred2d, loss2d = pl.pallas_call(
        rnn_wave_kernel,
        out_shape=(jax.ShapeDtypeStruct((B, 1), jnp.int32),
                   jax.ShapeDtypeStruct((1, 1), jnp.float32)),
        in_specs=[vmem] * 7,
        out_specs=(vmem, vmem),
        cost_estimate=cost,
    )(ids_tm, packed["emb_proj"], packed["bigw"], packed["biasr"],
      packed["wout"], packed["bout"], tgt2d)

    return pred2d.reshape(-1), loss2d[0, 0]


# ---------------------------------------------------------------------------
# Pure-JAX reference (for correctness check)
# ---------------------------------------------------------------------------
def reference_forward(input_text, targets, params, hidden, num_layers):
    x = params["embd"][input_text].astype(jnp.float32)           # (B, T, E)
    B, T, _ = x.shape
    for l in range(num_layers):
        h = jnp.zeros((B, hidden), jnp.float32)
        outs = []
        for t in range(T):
            h = jnp.tanh(x[:, t] @ params["w_ih"][l].T + params["b_ih"][l]
                         + h @ params["w_hh"][l].T + params["b_hh"][l])
            outs.append(h)
        x = jnp.stack(outs, axis=1)
    logits = x[:, -1] @ params["w_out"].T + params["b_out"]      # (B, 2)
    lse = jax.nn.logsumexp(logits, axis=1)
    loss = jnp.mean(lse - logits[jnp.arange(B), targets])
    pred = jnp.argmax(logits, axis=1).astype(jnp.int32)
    return pred, loss


if __name__ == "__main__":
    # small shapes consistent with the module
    B, T = 2, 8
    VOCAB, EMB_DIM, HIDDEN, NUM_LAYERS = 32, 16, 32, 2

    key = jax.random.PRNGKey(0)
    k_par, k_tok, k_tgt = jax.random.split(key, 3)

    params = init_params(k_par, VOCAB, EMB_DIM, HIDDEN, NUM_LAYERS)
    packed = pack_params(params, HIDDEN, NUM_LAYERS)             # one-time packing
    input_text = jax.random.randint(k_tok, (B, T), 0, VOCAB, dtype=jnp.int32)
    targets = jax.random.randint(k_tgt, (B,), 0, 2, dtype=jnp.int32)

    fwd = jax.jit(my_model_forward)
    pred, loss = fwd(input_text, targets, packed)
    jax.block_until_ready((pred, loss))

    pred_ref, loss_ref = reference_forward(input_text, targets, params,
                                           HIDDEN, NUM_LAYERS)
    assert jnp.all(pred == pred_ref), (pred, pred_ref)
    assert jnp.allclose(loss, loss_ref, rtol=1e-5, atol=1e-5), (loss, loss_ref)

    print("KERNEL_OK")
</pallas_src>

<mosaic_0001>
module attributes {stable_mosaic.version = 11 : i64} {
  func.func @rnn_wave_kernel(%arg0: memref<16x1xi32, #tpu.memory_space<vmem>>, %arg1: memref<32x64xf32, #tpu.memory_space<vmem>>, %arg2: memref<64x64xf32, #tpu.memory_space<vmem>>, %arg3: memref<1x64xf32, #tpu.memory_space<vmem>>, %arg4: memref<32x2xf32, #tpu.memory_space<vmem>>, %arg5: memref<1x2xf32, #tpu.memory_space<vmem>>, %arg6: memref<2x1xi32, #tpu.memory_space<vmem>>, %arg7: memref<2x1xi32, #tpu.memory_space<vmem>>, %arg8: memref<1x1xf32, #tpu.memory_space<vmem>>) attributes {dimension_semantics = [], scalar_prefetch = 0 : i64, scratch_operands = 0 : i64, tpu.core_type = #tpu.core_type<tc>} {
    %c0 = arith.constant 0 : index
    %c0_0 = arith.constant 0 : index
    %0 = vector.load %arg0[%c0, %c0_0] : memref<16x1xi32, #tpu.memory_space<vmem>>, vector<16x1xi32>
    %1 = tpu.iota {dimensions = array<i32: 1>} : vector<16x32xi32>
    %2 = vector.broadcast %0 : vector<16x1xi32> to vector<16x32xi32>
    %3 = arith.cmpi eq, %1, %2 : vector<16x32xi32>
    %4 = arith.extui %3 : vector<16x32xi1> to vector<16x32xi32>
    %5 = arith.sitofp %4 : vector<16x32xi32> to vector<16x32xf32>
    %c0_1 = arith.constant 0 : index
    %c0_2 = arith.constant 0 : index
    %6 = vector.load %arg3[%c0_1, %c0_2] : memref<1x64xf32, #tpu.memory_space<vmem>>, vector<1x64xf32>
    %c0_3 = arith.constant 0 : index
    %c0_4 = arith.constant 0 : index
    %7 = vector.load %arg1[%c0_3, %c0_4] : memref<32x64xf32, #tpu.memory_space<vmem>>, vector<32x64xf32>
    %cst = arith.constant dense<0.000000e+00> : vector<16x64xf32>
    %8 = tpu.matmul %5, %7, %cst {dimension_numbers = #tpu.dot_dimension_numbers<[1], [0], [0], [1], [0, 0, 1, 1], [], []>} : vector<16x32xf32>, vector<32x64xf32>, vector<16x64xf32> -> vector<16x64xf32>
    %9 = vector.broadcast %6 : vector<1x64xf32> to vector<16x64xf32>
    %10 = arith.addf %8, %9 : vector<16x64xf32>
    %c0_5 = arith.constant 0 : index
    %c0_6 = arith.constant 0 : index
    %11 = vector.load %arg2[%c0_5, %c0_6] : memref<64x64xf32, #tpu.memory_space<vmem>>, vector<64x64xf32>
    %cst_7 = arith.constant 0.000000e+00 : f32
    %12 = vector.broadcast %cst_7 : f32 to vector<2x64xf32>
    %cst_8 = arith.constant dense<0.000000e+00> : vector<2x64xf32>
    %13 = tpu.matmul %12, %11, %cst_8 {dimension_numbers = #tpu.dot_dimension_numbers<[1], [0], [0], [1], [0, 0, 1, 1], [], []>} : vector<2x64xf32>, vector<64x64xf32>, vector<2x64xf32> -> vector<2x64xf32>
    %14 = vector.extract_strided_slice %10 {offsets = [0, 0], sizes = [2, 64], strides = [1, 1]} : vector<16x64xf32> to vector<2x64xf32>
    %15 = arith.addf %13, %14 : vector<2x64xf32>
    %16 = math.tanh %15 : vector<2x64xf32>
    %17 = tpu.iota {dimensions = array<i32: 1>} : vector<2x64xi32>
    %c32_i32 = arith.constant 32 : i32
    %18 = vector.broadcast %c32_i32 : i32 to vector<2x64xi32>
    %19 = arith.cmpi slt, %17, %18 : vector<2x64xi32>
    %20 = arith.select %19, %16, %12 : vector<2x64xi1>, vector<2x64xf32>
    %cst_9 = arith.constant dense<0.000000e+00> : vector<2x64xf32>
    %21 = tpu.matmul %20, %11, %cst_9 {dimension_numbers = #tpu.dot_dimension_numbers<[1], [0], [0], [1], [0, 0, 1, 1], [], []>} : vector<2x64xf32>, vector<64x64xf32>, vector<2x64xf32> -> vector<2x64xf32>
    %22 = vector.extract_strided_slice %10 {offsets = [2, 0], sizes = [2, 64], strides = [1, 1]} : vector<16x64xf32> to vector<2x64xf32>
    %23 = arith.addf %21, %22 : vector<2x64xf32>
    %24 = math.tanh %23 : vector<2x64xf32>
    %cst_10 = arith.constant dense<0.000000e+00> : vector<2x64xf32>
    %25 = tpu.matmul %24, %11, %cst_10 {dimension_numbers = #tpu.dot_dimension_numbers<[1], [0], [0], [1], [0, 0, 1, 1], [], []>} : vector<2x64xf32>, vector<64x64xf32>, vector<2x64xf32> -> vector<2x64xf32>
    %26 = vector.extract_strided_slice %10 {offsets = [4, 0], sizes = [2, 64], strides = [1, 1]} : vector<16x64xf32> to vector<2x64xf32>
    %27 = arith.addf %25, %26 : vector<2x64xf32>
    %28 = math.tanh %27 : vector<2x64xf32>
    %cst_11 = arith.constant dense<0.000000e+00> : vector<2x64xf32>
    %29 = tpu.matmul %28, %11, %cst_11 {dimension_numbers = #tpu.dot_dimension_numbers<[1], [0], [0], [1], [0, 0, 1, 1], [], []>} : vector<2x64xf32>, vector<64x64xf32>, vector<2x64xf32> -> vector<2x64xf32>
    %30 = vector.extract_strided_slice %10 {offsets = [6, 0], sizes = [2, 64], strides = [1, 1]} : vector<16x64xf32> to vector<2x64xf32>
    %31 = arith.addf %29, %30 : vector<2x64xf32>
    %32 = math.tanh %31 : vector<2x64xf32>
    %cst_12 = arith.constant dense<0.000000e+00> : vector<2x64xf32>
    %33 = tpu.matmul %32, %11, %cst_12 {dimension_numbers = #tpu.dot_dimension_numbers<[1], [0], [0], [1], [0, 0, 1, 1], [], []>} : vector<2x64xf32>, vector<64x64xf32>, vector<2x64xf32> -> vector<2x64xf32>
    %34 = vector.extract_strided_slice %10 {offsets = [8, 0], sizes = [2, 64], strides = [1, 1]} : vector<16x64xf32> to vector<2x64xf32>
    %35 = arith.addf %33, %34 : vector<2x64xf32>
    %36 = math.tanh %35 : vector<2x64xf32>
    %cst_13 = arith.constant dense<0.000000e+00> : vector<2x64xf32>
    %37 = tpu.matmul %36, %11, %cst_13 {dimension_numbers = #tpu.dot_dimension_numbers<[1], [0], [0], [1], [0, 0, 1, 1], [], []>} : vector<2x64xf32>, vector<64x64xf32>, vector<2x64xf32> -> vector<2x64xf32>
    %38 = vector.extract_strided_slice %10 {offsets = [10, 0], sizes = [2, 64], strides = [1, 1]} : vector<16x64xf32> to vector<2x64xf32>
    %39 = arith.addf %37, %38 : vector<2x64xf32>
    %40 = math.tanh %39 : vector<2x64xf32>
    %cst_14 = arith.constant dense<0.000000e+00> : vector<2x64xf32>
    %41 = tpu.matmul %40, %11, %cst_14 {dimension_numbers = #tpu.dot_dimension_numbers<[1], [0], [0], [1], [0, 0, 1, 1], [], []>} : vector<2x64xf32>, vector<64x64xf32>, vector<2x64xf32> -> vector<2x64xf32>
    %42 = vector.extract_strided_slice %10 {offsets = [12, 0], sizes = [2, 64], strides = [1, 1]} : vector<16x64xf32> to vector<2x64xf32>
    %43 = arith.addf %41, %42 : vector<2x64xf32>
    %44 = math.tanh %43 : vector<2x64xf32>
    %cst_15 = arith.constant dense<0.000000e+00> : vector<2x64xf32>
    %45 = tpu.matmul %44, %11, %cst_15 {dimension_numbers = #tpu.dot_dimension_numbers<[1], [0], [0], [1], [0, 0, 1, 1], [], []>} : vector<2x64xf32>, vector<64x64xf32>, vector<2x64xf32> -> vector<2x64xf32>
    %46 = vector.extract_strided_slice %10 {offsets = [14, 0], sizes = [2, 64], strides = [1, 1]} : vector<16x64xf32> to vector<2x64xf32>
    %47 = arith.addf %45, %46 : vector<2x64xf32>
    %48 = math.tanh %47 : vector<2x64xf32>
    %cst_16 = arith.constant dense<0.000000e+00> : vector<2x64xf32>
    %49 = tpu.matmul %48, %11, %cst_16 {dimension_numbers = #tpu.dot_dimension_numbers<[1], [0], [0], [1], [0, 0, 1, 1], [], []>} : vector<2x64xf32>, vector<64x64xf32>, vector<2x64xf32> -> vector<2x64xf32>
    %50 = vector.broadcast %6 : vector<1x64xf32> to vector<2x64xf32>
    %51 = arith.addf %49, %50 : vector<2x64xf32>
    %52 = math.tanh %51 : vector<2x64xf32>
    %53 = vector.extract_strided_slice %52 {offsets = [0, 32], sizes = [2, 32], strides = [1, 1]} : vector<2x64xf32> to vector<2x32xf32>
    %c0_17 = arith.constant 0 : index
    %c0_18 = arith.constant 0 : index
    %54 = vector.load %arg4[%c0_17, %c0_18] : memref<32x2xf32, #tpu.memory_space<vmem>>, vector<32x2xf32>
    %cst_19 = arith.constant dense<0.000000e+00> : vector<2x2xf32>
    %55 = tpu.matmul %53, %54, %cst_19 {dimension_numbers = #tpu.dot_dimension_numbers<[1], [0], [0], [1], [0, 0, 1, 1], [], []>} : vector<2x32xf32>, vector<32x2xf32>, vector<2x2xf32> -> vector<2x2xf32>
    %c0_20 = arith.constant 0 : index
    %c0_21 = arith.constant 0 : index
    %56 = vector.load %arg5[%c0_20, %c0_21] : memref<1x2xf32, #tpu.memory_space<vmem>>, vector<1x2xf32>
    %57 = vector.broadcast %56 : vector<1x2xf32> to vector<2x2xf32>
    %58 = arith.addf %55, %57 : vector<2x2xf32>
    %59 = vector.extract_strided_slice %58 {offsets = [0, 0], sizes = [2, 1], strides = [1, 1]} : vector<2x2xf32> to vector<2x1xf32>
    %60 = vector.extract_strided_slice %58 {offsets = [0, 1], sizes = [2, 1], strides = [1, 1]} : vector<2x2xf32> to vector<2x1xf32>
    %61 = arith.maximumf %59, %60 : vector<2x1xf32>
    %62 = arith.subf %59, %61 : vector<2x1xf32>
    %63 = math.exp %62 : vector<2x1xf32>
    %64 = arith.subf %60, %61 : vector<2x1xf32>
    %65 = math.exp %64 : vector<2x1xf32>
    %66 = arith.addf %63, %65 : vector<2x1xf32>
    %67 = math.log %66 : vector<2x1xf32>
    %68 = arith.addf %61, %67 : vector<2x1xf32>
    %c0_22 = arith.constant 0 : index
    %c0_23 = arith.constant 0 : index
    %69 = vector.load %arg6[%c0_22, %c0_23] : memref<2x1xi32, #tpu.memory_space<vmem>>, vector<2x1xi32>
    %c1_i32 = arith.constant 1 : i32
    %70 = vector.broadcast %c1_i32 : i32 to vector<2x1xi32>
    %71 = arith.cmpi eq, %69, %70 : vector<2x1xi32>
    %72 = arith.select %71, %60, %59 : vector<2x1xi1>, vector<2x1xf32>
    %73 = arith.subf %68, %72 : vector<2x1xf32>
    %74 = vector.shape_cast %73 : vector<2x1xf32> to vector<1x2x1xf32>
    %cst_24 = arith.constant dense<0.000000e+00> : vector<1xf32>
    %75 = vector.multi_reduction <add>, %74, %cst_24 [1, 2] : vector<1x2x1xf32> to vector<1xf32>
    %76 = vector.shape_cast %75 : vector<1xf32> to vector<1x1x1xf32>
    %77 = vector.extract %76[0, 0, 0] : f32 from vector<1x1x1xf32>
    %cst_25 = arith.constant 2.000000e+00 : f32
    %78 = arith.divf %77, %cst_25 : f32
    %79 = vector.broadcast %78 : f32 to vector<1x1xf32>
    %c0_26 = arith.constant 0 : index
    %c0_27 = arith.constant 0 : index
    %80 = vector.load %arg8[%c0_26, %c0_27] : memref<1x1xf32, #tpu.memory_space<vmem>>, vector<1x1xf32>
    tpu.vector_store %arg8[%c0_26, %c0_27], %79 {strides = array<i32>} : memref<1x1xf32, #tpu.memory_space<vmem>>, vector<1x1xf32>,
    %81 = arith.cmpf ogt, %60, %59 : vector<2x1xf32>
    %82 = arith.extui %81 : vector<2x1xi1> to vector<2x1xi32>
    %c0_28 = arith.constant 0 : index
    %c0_29 = arith.constant 0 : index
    %83 = vector.load %arg7[%c0_28, %c0_29] : memref<2x1xi32, #tpu.memory_space<vmem>>, vector<2x1xi32>
    tpu.vector_store %arg7[%c0_28, %c0_29], %82 {strides = array<i32>} : memref<2x1xi32, #tpu.memory_space<vmem>>, vector<2x1xi32>,
    return
  }
}

</mosaic_0001>

<bundles_post_ra>
// kernel: my_model_forward.1
= control target key start
LH: loop header
LB: loop body
LE: loop exit
PB: predicated region body
PF: predicated region fallthrough
CT: control target
= control target key end

     0   :  { %14 = vsyncpa [#allocation3], 0  ;;  %s1819_s0 = inlined_call_operand.vmem [shape: s32[16,1], index: 0, kind: input, shape index: {}]   ;;  %s1820_s1 = inlined_call_operand.vmem [shape: f32[32,64], index: 1, kind: input, shape index: {}]   ;;  %s1821_s2 = inlined_call_operand.vmem [shape: f32[64,64], index: 2, kind: input, shape index: {}]   ;;  %s1822_s3 = inlined_call_operand.hbm [shape: f32[1,64], index: 3, kind: input, shape index: {}]   ;;  %s1823_s4 = inlined_call_operand.vmem [shape: f32[32,2], index: 4, kind: input, shape index: {}]   ;;  %s1824_s5 = inlined_call_operand.hbm [shape: f32[1,2], index: 5, kind: input, shape index: {}]   ;;  %s1825_s6 = inlined_call_operand.vmem [shape: s32[2,1], index: 6, kind: input, shape index: {}]   ;;  %s1826_s7 = inlined_call_operand.vmem [shape: s32[2,1], index: 7, kind: output, shape index: {0}]   ;;  %s1827_s8 = inlined_call_operand.hbm [shape: f32[1,1], index: 8, kind: output, shape index: {1}]  }
   0x1   :  { %15 = vsyncpa [#allocation6], 0 }
   0x2   :  { %16 = vsyncpa [#allocation4], 0  ;;  %s1542_s27 = smov [#allocation2]   ;;  %s1543_s29 = smov [#allocation5]  }
   0x3   :  { %s29_s28 = sshll.u32 %s1542_s27, 4  ;;  %s41_s30 = sshll.u32 %s1543_s29, 4  ;;  %s30_s28 = int_to_ptr.vmem [resolvable:$true] %s29_s28  ;;  %s42_s30 = int_to_ptr.vmem [resolvable:$true] %s41_s30 }
   0x4   :  { %s1470_s11 = scalar_lea.hbm %s1822_s3, 16 }
   0x5   :  { %p1471_p0 = scmp.ne.s32.totalorder %s1822_s3, %s1470_s11  ;;  %p1474_p1 = scmp.lt.u32.totalorder %s1470_s11, %s1822_s3 }
   0x7   :  { %p1476_p2 = pnand %p1474_p1, %p1471_p0 }
   0x9   :  { %1479 = shalt.err (!%p1476_p2)
}
   0xa   :  { %s1480_s16 = scalar_lea.vmem %s30_s28, 16  ;;  %s1484_s17 = scalar_lea.vmem %s30_s28, 32 }
   0xb   :  { %p1481_p3 = scmp.ne.s32.totalorder %s30_s28, %s1480_s16  ;;  %p1485_p4 = scmp.lt.s32.totalorder %s30_s28, %s30_s28 }
   0xc   :  { %p1486_p5 = scmp.lt.s32.totalorder %s1484_s17, %s1480_s16 }
   0xe   :  { %p1487_p6 = por %p1486_p5, %p1485_p4 }
  0x10   :  { %p1488_p7 = pnand %p1487_p6, %p1481_p3 }
  0x12   :  { %1491 = shalt.err (!%p1488_p7)
}
  0x13   :  { %32 = dma.hbm_to_vmem [thread:$0]  %s1822_s3, 16, %s30_s28, [#allocation3]  }
  0x14   :  { %s1492_s22 = scalar_lea.hbm %s1824_s5, 16 }
  0x15   :  { %p1493_p8 = scmp.ne.s32.totalorder %s1824_s5, %s1492_s22  ;;  %p1496_p9 = scmp.lt.u32.totalorder %s1492_s22, %s1824_s5 }
  0x17   :  { %p1498_p10 = pnand %p1496_p9, %p1493_p8 }
  0x19   :  { %1501 = shalt.err (!%p1498_p10)
}
  0x1a   :  { %s1502_s27 = scalar_lea.vmem %s42_s30, 16  ;;  %s1506_s29 = scalar_lea.vmem %s42_s30, 32 }
  0x1b   :  { %p1503_p11 = scmp.ne.s32.totalorder %s42_s30, %s1502_s27  ;;  %p1507_p12 = scmp.lt.s32.totalorder %s42_s30, %s42_s30 }
  0x1c   :  { %p1508_p13 = scmp.lt.s32.totalorder %s1506_s29, %s1502_s27 }
  0x1e   :  { %p1509_p0 = por %p1508_p13, %p1507_p12 }
  0x20   :  { %p1510_p1 = pnand %p1509_p0, %p1503_p11 }
  0x22   :  { %1513 = shalt.err (!%p1510_p1)
}
  0x23   :  { %44 = dma.hbm_to_vmem [thread:$0]  %s1824_s5, 16, %s42_s30, [#allocation6]  }
  0x24   :  { %1536 = dma.done.wait [#allocation3], 16  }
  0x25   :  { %1537 = vsyncadd [#allocation3], 4294967280 }
  0x26   :  { %1538 = dma.done.wait [#allocation6], 16  }
  0x27   :  { %1539 = vsyncadd [#allocation6], 4294967280  ;;  %v1544_v0 = vmov 0   ;;  %v1545_v1 = vmov 0.0|0.0   ;;  %v53_v2 = vld [vmem:[%s1819_s0] sm:$0xff]  ;;  %v163_v4 = vld [vmem:[%s1821_s2 + $0x8] sm:$0xff]  ;;  %v55_v23 = vlaneseq }
  0x28   :  { %1445 = vset.pattern.permute.xlu0 %v1544_v0  ;;  %1319 = vmatprep.subr.bf16.mxu1 %v1545_v1  ;;  %v162_v3 = vld [vmem:[%s1821_s2] sm:$0xff]  ;;  %v164_v5 = vld [vmem:[%s1821_s2 + $0x10] sm:$0xff]  ;;  %v165_v6 = vld [vmem:[%s1821_s2 + $0x18] sm:$0xff]  ;;  %vm1546_vm0 = vmmov 0   ;;  %v1547_v21 = vmov 0.0   ;;  %vm80_vm1 = vcmask 261120  }
  0x29   :  { %58 = vperm.xlu0 %1445, %v53_v2   ;;  %v54_v7 = vld [vmem:[%s1819_s0 + $0x8] sm:$0xff]  ;;  %v1641_v8 = vpack.c.bf16 %v163_v4, %v162_v3  ;;  %v70_v9 = vld [vmem:[%s1820_s1] sm:$0xff]  ;;  %v72_v12 = vld [vmem:[%s1820_s1 + $0x10] sm:$0xff]  ;;  %v1656_v14 = vpack.c.bf16 %v165_v6, %v164_v5  ;;  %1145 = vmatprep.mubr.msk.f32.mxu1 %vm1546_vm0, %v1547_v21  ;;  %v56_v24 = vand.u32 127, %v55_v23  ;;  %vm170_vm5 = vcmask 523264   ;;  %s1548_s16 = smov 96  }
  0x2a   :  { %v71_v10 = vld [vmem:[%s1820_s1 + $0x8] sm:$0xff]  ;;  %v73_v13 = vld [vmem:[%s1820_s1 + $0x18] sm:$0xff]  ;;  %v166_v16 = vld [vmem:[%s1821_s2 + $0x20] sm:$0xff]  ;;  %s1550_s17 = smov 1   ;;  %vm966_vm8 = vcmask 1024   ;;  %vm981_vm9 = vcmask 0  }
  0x2b   :  { %v1311_v11 = vpack.c.bf16 %v71_v10, %v70_v9  ;;  %1321 = vmatpush3.bf16.msra.mxu1 %v1641_v8  ;;  %v1315_v15 = vpack.c.bf16 %v73_v13, %v72_v12  ;;  %v167_v17 = vld [vmem:[%s1821_s2 + $0x28] sm:$0xff]  ;;  %v168_v19 = vld [vmem:[%s1821_s2 + $0x30] sm:$0xff]  ;;  %v169_v20 = vld [vmem:[%s1821_s2 + $0x38] sm:$0xff]  ;;  %vm245_vm4 = vcmp.lt.s32.totalorder %v56_v24, 32 }
  0x2c   :  { %1322 = vmatprep.subr.bf16.mxu1 %v1545_v1  ;;  %v1666_v18 = vpack.c.bf16 %v167_v17, %v166_v16  ;;  %v1678_v22 = vpack.c.bf16 %v169_v20, %v168_v19  ;;  %v1709_v31 = vld [vmem:[#allocation2] ss:$0 sm:$0xff]  ;;  %v854_v12 = vld [vmem:[%s1823_s4 + $0x8] sm:$0xff]  ;;  %v855_v13 = vld [vmem:[%s1823_s4 + $0x10] sm:$0xff] }
  0x2d   :  { %61 = vperm.xlu0 %1445, %v54_v7   ;;  %1312 = vmatprep.subr.bf16.mxu0 %v1311_v11 }
  0x2e   :  { %1314 = vmatpush3.bf16.msra.mxu0 %v1311_v11  ;;  %v853_v11 = vld [vmem:[%s1823_s4] sm:$0xff] }
  0x2f   :  { %1324 = vmatpush3.bf16.msra.mxu1 %v1656_v14  ;;  %1316 = vmatprep.subr.bf16.mxu0 %v1315_v15 }
  0x30   :  { %1325 = vmatprep.subr.bf16.mxu1 %v1545_v1 }
  0x32   :  { %1318 = vmatpush3.bf16.msra.mxu0 %v1315_v15  ;;  %v856_v15 = vld [vmem:[%s1823_s4 + $0x18] sm:$0xff]  ;;  %s1549_s4 = smov 127  }
  0x33   :  { %1327 = vmatpush3.bf16.msra.mxu1 %v1666_v18  ;;  %1331 = vmatprep.subr.bf16.mxu0 %v1545_v1  ;;  %v1431_v16 = vpack.c.bf16 %v856_v15, %v855_v13 }
  0x34   :  { %1328 = vmatprep.subr.bf16.mxu1 %v1545_v1 }
  0x37   :  { %1330 = vmatpush3.bf16.msra.mxu1 %v1678_v22 }
  0x38   :  { %1343 = vmatprep.subr.bf16.mxu1 %v1545_v1 }
  0x3a   :  { %1146 = vmatmul.mubr.f32.vlgmr.msra.gmra.mrb[0].mxu1 %v1547_v21 }
  0x3b   :  { %1345 = vmatpush3.bf16.msra.mxu1 %v1641_v8  ;;  %1183 = vmatprep.mubr.msk.f32.mxu1 %vm1546_vm0, %v1547_v21 }
  0x3c   :  { %1346 = vmatprep.subr.bf16.mxu1 %v1545_v1 }
  0x3f   :  { %1348 = vmatpush3.bf16.msra.mxu1 %v1656_v14 }
  0x40   :  { %1349 = vmatprep.subr.bf16.mxu1 %v1545_v1 }
  0x43   :  { %1351 = vmatpush3.bf16.msra.mxu1 %v1666_v18 }
  0x44   :  { %1352 = vmatprep.subr.bf16.mxu1 %v1545_v1 }
  0x47   :  { %1354 = vmatpush3.bf16.msra.mxu1 %v1678_v22 }
  0x48   :  { %1367 = vmatprep.subr.bf16.mxu1 %v1545_v1 }
  0xa8   :  { %v59_v25 = vpop.permute.xlu0 %58 }
  0xa9   :  { %vm63_vm2 = vcmp.eq.s32.totalorder %v56_v24, %v59_v25 }
  0xaa   :  { %v1011_v26 = vsel %vm63_vm2, 1.0, %v1547_v21 }
  0xab   :  { %1126 = vmatprep.mubr.msk.f32.mxu0 %vm80_vm1, %v1011_v26 }
  0xac   :  { %v62_v27 = vpop.permute.xlu0 %61 }
  0xad   :  { %vm64_vm3 = vcmp.eq.s32.totalorder %v56_v24, %v62_v27 }
  0xae   :  { %v1012_v28 = vsel %vm64_vm3, 1.0, %v1547_v21 }
  0xaf   :  { %1127 = vmatmul.mubr.msk.f32.vlgmr.msra.gmra.mrb[0].mxu0 %vm80_vm1, %v1012_v28 }
  0xb0   :  { %1333 = vmatpush3.bf16.msra.mxu0 %v1641_v8  ;;  %1164 = vmatprep.mubr.msk.f32.mxu0 %vm1546_vm0, %v1547_v21 }
  0xb1   :  { %1334 = vmatprep.subr.bf16.mxu0 %v1545_v1 }
  0xb4   :  { %1336 = vmatpush3.bf16.msra.mxu0 %v1656_v14 }
  0xb5   :  { %1337 = vmatprep.subr.bf16.mxu0 %v1545_v1 }
  0xb8   :  { %1339 = vmatpush3.bf16.msra.mxu0 %v1666_v18 }
  0xb9   :  { %1340 = vmatprep.subr.bf16.mxu0 %v1545_v1 }
  0xbc   :  { %1342 = vmatpush3.bf16.msra.mxu0 %v1678_v22 }
  0xbd   :  { %1355 = vmatprep.subr.bf16.mxu0 %v1545_v1 }
 0x10d   :  { %v240_v29 = vpop.f32.mrb[0].mxu1 }
 0x10e   :  { %v1147_v30 = vpop.f32.mrb[1].mxu1 }
 0x182   :  { %v1711_v32 = vpop.f32.mrb[0].mxu0 }
 0x183   :  { %v153_v33 = vpop.f32.mrb[1].mxu0  ;;  %v159_v53 = vadd.f32 %v1711_v32, %v1709_v31 }
 0x184   :  { %v154_v34 = vadd.f32 %v1709_v31, %v153_v33 }
 0x185   :  { %v551_v58 = vrot.slane %v159_v53, 2  ;;  %v627_v63 = vrot.slane %v159_v53, 4  ;;  %v703_v6 = vrot.slane %v159_v53, 6 }
 0x186   :  { %v241_v35 = vadd.f32 %v240_v29, %v154_v34  ;;  %v248_v38 = vrot.slane %v154_v34, 2  ;;  %v324_v43 = vrot.slane %v154_v34, 4  ;;  %v400_v48 = vrot.slane %v154_v34, 6 }
 0x188   :  { %1446 = vtanh.f32 %v241_v35 }
 0x192   :  { %v1447_v36 = vpop.eup %1446 }
 0x193   :  { %v246_v37 = vsel %vm245_vm4, %v1447_v36, 0.0 }
 0x194   :  { %1165 = vmatmul.mubr.msk.f32.vlgmr.msra.gmra.mrb[2].mxu0 %vm170_vm5, %v246_v37 }
 0x195   :  { %1357 = vmatpush3.bf16.msra.mxu0 %v1641_v8  ;;  %1202 = vmatprep.mubr.msk.f32.mxu0 %vm1546_vm0, %v1547_v21 }
 0x196   :  { %1358 = vmatprep.subr.bf16.mxu0 %v1545_v1 }
 0x199   :  { %1360 = vmatpush3.bf16.msra.mxu0 %v1656_v14 }
 0x19a   :  { %1361 = vmatprep.subr.bf16.mxu0 %v1545_v1 }
 0x19d   :  { %1363 = vmatpush3.bf16.msra.mxu0 %v1666_v18 }
 0x19e   :  { %1364 = vmatprep.subr.bf16.mxu0 %v1545_v1 }
 0x1a1   :  { %1366 = vmatpush3.bf16.msra.mxu0 %v1678_v22 }
 0x1a2   :  { %1379 = vmatprep.subr.bf16.mxu0 %v1545_v1 }
 0x267   :  { %v319_v39 = vpop.f32.mrb[2].mxu0 }
 0x268   :  { %v320_v40 = vadd.f32 %v319_v39, %v248_v38  ;;  %v1166_v41 = vpop.f32.mrb[3].mxu0  ;;  %v962_v38 = vld [vmem:[%s1825_s6] sm:$0x3]  ;;  %s1551_s6 = smov [#allocation7]  }
 0x269   :  { %vm963_vm7 = vcmp.eq.s32.totalorder %v962_v38, 1  ;;  %s999_s22 = sshll.u32 %s1551_s6, 4  ;;  %s1000_s22 = int_to_ptr.vmem [resolvable:$true] %s999_s22 }
 0x26a   :  { %1448 = vtanh.f32 %v320_v40  ;;  %s1514_s25 = scalar_lea.vmem %s1000_s22, 16  ;;  %s1518_s26 = scalar_lea.vmem %s1000_s22, 32 }
 0x26b   :  { %p1515_p2 = scmp.ne.s32.totalorder %s1000_s22, %s1514_s25  ;;  %p1519_p3 = scmp.lt.s32.totalorder %s1000_s22, %s1000_s22 }
 0x26c   :  { %p1520_p4 = scmp.lt.s32.totalorder %s1518_s26, %s1514_s25 }
 0x26e   :  { %p1521_p5 = por %p1520_p4, %p1519_p3 }
 0x270   :  { %p1522_p6 = pnand %p1521_p5, %p1515_p2 }
 0x274   :  { %v1449_v42 = vpop.eup %1448 }
 0x275   :  { %1184 = vmatmul.mubr.msk.f32.vlgmr.msra.gmra.mrb[2].mxu1 %vm170_vm5, %v1449_v42 }
 0x276   :  { %1369 = vmatpush3.bf16.msra.mxu1 %v1641_v8  ;;  %1221 = vmatprep.mubr.msk.f32.mxu1 %vm1546_vm0, %v1547_v21 }
 0x277   :  { %1370 = vmatprep.subr.bf16.mxu1 %v1545_v1 }
 0x27a   :  { %1372 = vmatpush3.bf16.msra.mxu1 %v1656_v14 }
 0x27b   :  { %1373 = vmatprep.subr.bf16.mxu1 %v1545_v1 }
 0x27e   :  { %1375 = vmatpush3.bf16.msra.mxu1 %v1666_v18 }
 0x27f   :  { %1376 = vmatprep.subr.bf16.mxu1 %v1545_v1 }
 0x282   :  { %1378 = vmatpush3.bf16.msra.mxu1 %v1678_v22 }
 0x283   :  { %1391 = vmatprep.subr.bf16.mxu1 %v1545_v1 }
 0x348   :  { %v395_v44 = vpop.f32.mrb[2].mxu1 }
 0x349   :  { %v396_v45 = vadd.f32 %v395_v44, %v324_v43  ;;  %v1185_v46 = vpop.f32.mrb[3].mxu1 }
 0x34b   :  { %1450 = vtanh.f32 %v396_v45 }
 0x355   :  { %v1451_v47 = vpop.eup %1450 }
 0x356   :  { %1203 = vmatmul.mubr.msk.f32.vlgmr.msra.gmra.mrb[4].mxu0 %vm170_vm5, %v1451_v47 }
 0x357   :  { %1381 = vmatpush3.bf16.msra.mxu0 %v1641_v8  ;;  %1240 = vmatprep.mubr.msk.f32.mxu0 %vm1546_vm0, %v1547_v21 }
 0x358   :  { %1382 = vmatprep.subr.bf16.mxu0 %v1545_v1 }
 0x35b   :  { %1384 = vmatpush3.bf16.msra.mxu0 %v1656_v14 }
 0x35c   :  { %1385 = vmatprep.subr.bf16.mxu0 %v1545_v1 }
 0x35f   :  { %1387 = vmatpush3.bf16.msra.mxu0 %v1666_v18 }
 0x360   :  { %1388 = vmatprep.subr.bf16.mxu0 %v1545_v1 }
 0x363   :  { %1390 = vmatpush3.bf16.msra.mxu0 %v1678_v22 }
 0x364   :  { %1403 = vmatprep.subr.bf16.mxu0 %v1545_v1 }
 0x429   :  { %v471_v49 = vpop.f32.mrb[4].mxu0 }
 0x42a   :  { %v472_v50 = vadd.f32 %v471_v49, %v400_v48  ;;  %v1204_v51 = vpop.f32.mrb[5].mxu0 }
 0x42c   :  { %1452 = vtanh.f32 %v472_v50 }
 0x436   :  { %v1453_v52 = vpop.eup %1452 }
 0x437   :  { %1222 = vmatmul.mubr.msk.f32.vlgmr.msra.gmra.mrb[4].mxu1 %vm170_vm5, %v1453_v52 }
 0x438   :  { %1393 = vmatpush3.bf16.msra.mxu1 %v1641_v8  ;;  %1259 = vmatprep.mubr.msk.f32.mxu1 %vm1546_vm0, %v1547_v21 }
 0x439   :  { %1394 = vmatprep.subr.bf16.mxu1 %v1545_v1 }
 0x43c   :  { %1396 = vmatpush3.bf16.msra.mxu1 %v1656_v14 }
 0x43d   :  { %1397 = vmatprep.subr.bf16.mxu1 %v1545_v1 }
 0x440   :  { %1399 = vmatpush3.bf16.msra.mxu1 %v1666_v18 }
 0x441   :  { %1400 = vmatprep.subr.bf16.mxu1 %v1545_v1 }
 0x444   :  { %1402 = vmatpush3.bf16.msra.mxu1 %v1678_v22 }
 0x445   :  { %1415 = vmatprep.subr.bf16.mxu1 %v1545_v1 }
 0x50a   :  { %v545_v54 = vpop.f32.mrb[4].mxu1 }
 0x50b   :  { %v546_v55 = vadd.f32 %v545_v54, %v159_v53  ;;  %v1223_v56 = vpop.f32.mrb[5].mxu1 }
 0x50d   :  { %1454 = vtanh.f32 %v546_v55 }
 0x517   :  { %v1455_v57 = vpop.eup %1454 }
 0x518   :  { %1241 = vmatmul.mubr.msk.f32.vlgmr.msra.gmra.mrb[6].mxu0 %vm170_vm5, %v1455_v57 }
 0x519   :  { %1405 = vmatpush3.bf16.msra.mxu0 %v1641_v8  ;;  %1278 = vmatprep.mubr.msk.f32.mxu0 %vm1546_vm0, %v1547_v21 }
 0x51a   :  { %1406 = vmatprep.subr.bf16.mxu0 %v1545_v1 }
 0x51d   :  { %1408 = vmatpush3.bf16.msra.mxu0 %v1656_v14 }
 0x51e   :  { %1409 = vmatprep.subr.bf16.mxu0 %v1545_v1 }
 0x521   :  { %1411 = vmatpush3.bf16.msra.mxu0 %v1666_v18 }
 0x522   :  { %1412 = vmatprep.subr.bf16.mxu0 %v1545_v1 }
 0x525   :  { %1414 = vmatpush3.bf16.msra.mxu0 %v1678_v22 }
 0x526   :  { %1427 = vmatprep.subr.bf16.mxu0 %v1545_v1 }
 0x5eb   :  { %v622_v59 = vpop.f32.mrb[6].mxu0 }
 0x5ec   :  { %v623_v60 = vadd.f32 %v622_v59, %v551_v58  ;;  %v1242_v61 = vpop.f32.mrb[7].mxu0 }
 0x5ee   :  { %1456 = vtanh.f32 %v623_v60 }
 0x5f8   :  { %v1457_v62 = vpop.eup %1456 }
 0x5f9   :  { %1260 = vmatmul.mubr.msk.f32.vlgmr.msra.gmra.mrb[6].mxu1 %vm170_vm5, %v1457_v62 }
 0x5fa   :  { %1417 = vmatpush3.bf16.msra.mxu1 %v1641_v8  ;;  %1297 = vmatprep.mubr.msk.f32.mxu1 %vm1546_vm0, %v1547_v21 }
 0x5fb   :  { %1418 = vmatprep.subr.bf16.mxu1 %v1545_v1 }
 0x5fe   :  { %1420 = vmatpush3.bf16.msra.mxu1 %v1656_v14  ;;  %v1428_v14 = vpack.c.bf16 %v854_v12, %v853_v11 }
 0x5ff   :  { %1421 = vmatprep.subr.bf16.mxu1 %v1545_v1 }
 0x602   :  { %1423 = vmatpush3.bf16.msra.mxu1 %v1666_v18 }
 0x603   :  { %1424 = vmatprep.subr.bf16.mxu1 %v1545_v1 }
 0x606   :  { %1426 = vmatpush3.bf16.msra.mxu1 %v1678_v22  ;;  %v1024_v22 = vld [vmem:[#allocation5] ss:$0 sm:$0xff] }
 0x6cc   :  { %v698_v2 = vpop.f32.mrb[6].mxu1 }
 0x6cd   :  { %v699_v3 = vadd.f32 %v698_v2, %v627_v63  ;;  %v1261_v4 = vpop.f32.mrb[7].mxu1 }
 0x6cf   :  { %1458 = vtanh.f32 %v699_v3 }
 0x6d9   :  { %v1459_v5 = vpop.eup %1458 }
 0x6da   :  { %1279 = vmatmul.mubr.msk.f32.vlgmr.msra.gmra.mrb[8].mxu0 %vm170_vm5, %v1459_v5 }
 0x6db   :  { %1308 = vmatprep.mubr.msk.f32.mxu0 %vm1546_vm0, %v1547_v21  ;;  %1429 = vmatpush3.bf16.msra.mxu0 %v1428_v14 }
 0x6dc   :  { %1430 = vmatprep.subr.bf16.mxu0 %v1545_v1 }
 0x6df   :  { %1432 = vmatpush3.bf16.msra.mxu0 %v1431_v16 }
 0x7ad   :  { %v774_v7 = vpop.f32.mrb[8].mxu0 }
 0x7ae   :  { %v775_v8 = vadd.f32 %v774_v7, %v703_v6  ;;  %v1280_v9 = vpop.f32.mrb[9].mxu0 }
 0x7b0   :  { %1460 = vtanh.f32 %v775_v8 }
 0x7ba   :  { %v1461_v10 = vpop.eup %1460 }
 0x7bb   :  { %1298 = vmatmul.mubr.msk.f32.vlgmr.msra.gmra.mrb[8].mxu1 %vm170_vm5, %v1461_v10 }
 0x88e   :  { %v848_v17 = vpop.f32.mrb[8].mxu1 }
 0x88f   :  { %v849_v18 = vadd.f32 %v1709_v31, %v848_v17  ;;  %v1299_v19 = vpop.f32.mrb[9].mxu1 }
 0x891   :  { %1462 = vtanh.f32 %v849_v18 }
 0x89b   :  { %v1463_v20 = vpop.eup %1462 }
 0x89c   :  { %865 = vrot.lane.b32.xlu1 %v1463_v20, %s1548_s16 }
 0x90e   :  { %v866_v21 = vpop.permute.xlu1 %865 }
 0x90f   :  { %1309 = vmatmul.mubr.msk.f32.vlgmr.msra.gmra.mrb[10].mxu0 %vm80_vm1, %v866_v21 }
 0x9e2   :  { %v935_v23 = vpop.f32.mrb[10].mxu0 }
 0x9e3   :  { %v936_v24 = vadd.f32 %v1024_v22, %v935_v23  ;;  %v1310_v25 = vpop.f32.mrb[11].mxu0 }
 0x9e5   :  { %940 = vrot.lane.b32.xlu1 %v936_v24, %s1549_s4 }
 0xa57   :  { %v941_v26 = vpop.permute.xlu1 %940 }
 0xa58   :  { %v943_v1 = vmax.f32 %v936_v24, %v941_v26  ;;  %v964_v42 = vsel %vm963_vm7, %v941_v26, %v936_v24 }
 0xa5a   :  { %948 = vrot.lane.b32.xlu0 %v943_v1, %s1550_s17  ;;  %v944_v31 = vsub.f32 %v936_v24, %v943_v1 }
 0xa5c   :  { %v945_v32 = vmul.f32 1.442695, %v944_v31 }
 0xacc   :  { %v949_v27 = vpop.permute.xlu0 %948 }
 0xacd   :  { %v951_v28 = vsub.f32 %v936_v24, %v949_v27 }
 0xacf   :  { %v952_v29 = vmul.f32 1.442695, %v951_v28 }
 0xad1   :  { %1464 = vpow2.f32 %v952_v29 }
 0xad2   :  { %1466 = vpow2.f32 %v945_v32 }
 0xadb   :  { %v1465_v30 = vpop.eup %1464 }
 0xadc   :  { %955 = vrot.lane.b32.xlu1 %v1465_v30, %s1549_s4  ;;  %v1467_v33 = vpop.eup %1466 }
 0xae0   :  { %983 = vrot.lane.b32.xlu1 %v936_v24, %s1550_s17 }
 0xb4e   :  { %v956_v34 = vpop.permute.xlu1 %955 }
 0xb4f   :  { %v958_v35 = vadd.f32 %v1467_v33, %v956_v34 }
 0xb51   :  { %1468 = vlog2.f32 %v958_v35 }
 0xb52   :  { %v984_v36 = vpop.permute.xlu1 %983 }
 0xb53   :  { %vm986_vm6 = vcmp.gt.f32.partialorder %v936_v24, %v984_v36 }
 0xb54   :  { %v987_v37 = vsel %vm986_vm6, 1, %v1544_v0 }
 0xb55   :  { %988 = vrot.lane.b32.xlu1 %v987_v37, %s1549_s4 }
 0xb5b   :  { %v1469_v39 = vpop.eup %1468 }
 0xb5c   :  { %v960_v40 = vmul.f32 0.6931472, %v1469_v39 }
 0xb5e   :  { %v961_v41 = vadd.f32 %v960_v40, %v943_v1 }
 0xb60   :  { %v965_v43 = vsub.f32 %v961_v41, %v964_v42 }
 0xb62   :  { %v967_v44 = vsel %vm966_vm8, %v965_v43, 0.0 }
 0xb63   :  { %968 = vadd.xlane.f32.xlu0 %v967_v44 }
 0xbc7   :  { %v989_v45 = vpop.permute.xlu1 %988 }
 0xbc8   :  { %990 = vst.msk [vmem:[%s1826_s7] sm:$0x3] %vm966_vm8, %v989_v45 }
 0xbf0   :  { %v969_v0 = vpop.xlane.xlu0 %968 }
 0xbf1   :  { %v970_v46 = vrot.slane %v969_v0, 4 }
 0xbf3   :  { %v971_v47 = vadd.f32 %v970_v46, %v969_v0 }
 0xbf5   :  { %v972_v48 = vrot.slane %v971_v47, 2 }
 0xbf7   :  { %v973_v49 = vadd.f32 %v972_v48, %v971_v47 }
 0xbf9   :  { %v974_v50 = vrot.slane %v973_v49, 1 }
 0xbfb   :  { %v975_v51 = vadd.f32 %v974_v50, %v973_v49 }
 0xbfd   :  { %1433 = vpush %v975_v51 }
 0xc2e   :  { %s1434_s23 = spop %1433 }
 0xc2f   :  { %s979_s24 = smul.f32 0.5, %s1434_s23 }
 0xc31   :  { %v980_v52 = vstv %s979_s24 }
 0xc32   :  { %982 = vst.msk [vmem:[#allocation7] sm:$0x1] %vm981_vm9, %v980_v52 }
 0xc33   :  { %1525 = shalt.err (!%p1522_p6)
}
 0xc34   :  { %s1526_s27 = scalar_lea.hbm %s1827_s8, 16 }
 0xc35   :  { %p1527_p7 = scmp.ne.s32.totalorder %s1827_s8, %s1526_s27  ;;  %p1530_p8 = scmp.lt.u32.totalorder %s1526_s27, %s1827_s8 }
 0xc37   :  { %p1532_p9 = pnand %p1530_p8, %p1527_p7 }
 0xc39   :  { %1535 = shalt.err (!%p1532_p9)
}
 0xc3a   :  { %1002 = dma.vmem_to_hbm [thread:$0]  %s1000_s22, 16, %s1827_s8, [#allocation4]  }
 0xc3b   :  { %1540 = dma.done.wait [#allocation4], 16  }
 0xc3c   :  { %1541 = vsyncadd [#allocation4], 4294967280 }
 0xc3d   :  { %1008 = vsyncpa [#allocation3], 1 }
 0xc3e   :  { %1009 = vsyncpa [#allocation6], 1 }
 0xc3f   :  { %1010 = vsyncpa [#allocation4], 1 }

</bundles_post_ra>
